<compile_context>
chip_gen: v6e
topology: v6e:2x2x1
jax: 0.10.0
libtpu: 0.0.40
codegen_flags: <defaults>
</compile_context>

<pallas_src>
import functools

import numpy as np
import jax
import jax.numpy as jnp
from jax import lax
from jax.experimental import pallas as pl
from jax.experimental.pallas import tpu as pltpu

# 3x3 tap order: (dh, dw) == (kh-1, kw-1), i.e. OIHW kernel order (kh*3 + kw).
TAPS = tuple((dh, dw) for dh in (-1, 0, 1) for dw in (-1, 0, 1))


def resblock_kernel(x_ref, m_ref, w1_ref, b1_ref, w2_ref, b2_ref, o_ref, *, W):
    # x_ref : (1, Cp, L)   one batch-tile, f32; lane = img_in_tile*H*W + h*W + w
    # m_ref : (8, L)       f32 0/1 boundary-validity masks for off-center taps
    # w*_ref: (Cp, 9*Cp)   weights (MXU dtype), column = (kh*3 + kw)*Cp + ci
    # b*_ref: (Cp, 1)      f32 biases (broadcast over lanes)
    # o_ref : (1, Cp, L)   f32 output tile
    x = x_ref[0]                                    # (Cp, L), f32
    L = x.shape[-1]
    masks = m_ref[...]                              # (8, L), f32 0/1
    mxu_dtype = w1_ref.dtype

    # Explicit (dh, dw) -> mask-row mapping (None for the always-valid center).
    tap_mask = {}
    mi = 0
    for dh, dw in TAPS:
        if (dh, dw) == (0, 0):
            tap_mask[(dh, dw)] = None
        else:
            tap_mask[(dh, dw)] = masks[mi:mi + 1, :]   # (1, L)
            mi += 1

    def make_patch(a):
        # a: (Cp, L) f32 -> im2col patch (9*Cp, L) in MXU dtype.
        # Tap shifts via XLU lane roll; halo handling purely via 0/1 masks.
        taps = []
        for dh, dw in TAPS:
            off = dh * W + dw
            if off == 0:
                taps.append(a)                        # center tap: no shift/mask
            else:
                shifted = pltpu.roll(a, (-off) % L, 1)
                taps.append(shifted * tap_mask[(dh, dw)])
        # Cp is a multiple of 8 -> sublane-aligned f32 concat; single cast after.
        return jnp.concatenate(taps, axis=0).astype(mxu_dtype)

    # conv1 + bias + ReLU  (single MXU matmul, f32 accumulation)
    out1 = jnp.dot(w1_ref[...], make_patch(x), preferred_element_type=jnp.float32)
    out1 = jnp.maximum(out1 + b1_ref[...], 0.0)       # (Cp, L)

    # conv2 + bias + residual + ReLU
    out2 = jnp.dot(w2_ref[...], make_patch(out1), preferred_element_type=jnp.float32)
    out2 = out2 + b2_ref[...] + x
    o_ref[0] = jnp.maximum(out2, 0.0)


def residual_block_pallas(x_nchw, w1_oihw, b1, w2_oihw, b2,
                          *, mxu_dtype=jnp.bfloat16, batch_tiles=None):
    """x_nchw: (N, C, H, W) float32; weights in PyTorch OIHW layout.

    mxu_dtype=jnp.bfloat16 (default) uses bf16 MXU operands with f32
    accumulation (2-3x MXU throughput on v6e/v7x, also fine on v5e);
    pass jnp.float32 for bit-level-exact module numerics.
    """
    N, C, H, W = x_nchw.shape
    HW = H * W

    # 2 "parallel" batch tiles keep both v7x TensorCores busy; on v5e/v6e the
    # extra grid step is ~0.35us.  Falls back to a single tile if N is odd.
    if batch_tiles is None:
        batch_tiles = 2 if (N >= 2 and N % 2 == 0) else 1
    NT = batch_tiles
    npt = N // NT                        # images per batch tile
    L = npt * HW                         # lanes per tile (multiple of 128)
    Cp = -(-C // 8) * 8                  # pad channels to a full sublane group

    # Activations: (N,C,H,W) -> (NT, Cp, L), lane = img_in_tile*HW + h*W + w.
    x3 = x_nchw.reshape(NT, npt, C, HW).transpose(0, 2, 1, 3).reshape(NT, C, L)
    x3 = jnp.pad(x3, ((0, 0), (0, Cp - C), (0, 0)))

    # Weights: OIHW -> zero-pad channels -> (Cp, 9*Cp), column (kh*3+kw)*Cp+ci.
    def prep_w(w):
        wp = jnp.pad(w, ((0, Cp - C), (0, Cp - C), (0, 0), (0, 0)))
        return jnp.transpose(wp, (0, 2, 3, 1)).reshape(Cp, 9 * Cp).astype(mxu_dtype)

    def prep_b(b):
        return jnp.pad(b, (0, Cp - C)).reshape(Cp, 1).astype(jnp.float32)

    w1m, w2m = prep_w(w1_oihw), prep_w(w2_oihw)
    b1c, b2c = prep_b(b1), prep_b(b2)

    # Precomputed 0/1 boundary masks for the 8 off-center taps (host constants,
    # identical for every batch tile and both convs).
    q = np.arange(L) % HW
    hh, ww = q // W, q % W
    mask_rows = [((hh + dh >= 0) & (hh + dh < H) & (ww + dw >= 0) & (ww + dw < W))
                 for dh, dw in TAPS if (dh, dw) != (0, 0)]
    masks = jnp.asarray(np.stack(mask_rows).astype(np.float32))   # (8, L)

    kernel = functools.partial(resblock_kernel, W=W)

    # TODO(synk): for production C/H/W, add an H-tile grid axis (2-row halos)
    # plus Cin/Cout blocking (Cout, 9*Cin blocks >= 256 for the v6e/v7x MXU);
    # size blocks against v7x's 64 MiB physical / ~32 MiB scoped VMEM
    # (double-buffered inputs + the 9x-sized patch) and set vmem_limit_bytes.
    out = pl.pallas_call(
        kernel,
        out_shape=jax.ShapeDtypeStruct((NT, Cp, L), jnp.float32),
        grid=(NT,),
        in_specs=[
            pl.BlockSpec((1, Cp, L), lambda t: (t, 0, 0)),
            pl.BlockSpec((8, L), lambda t: (0, 0)),
            pl.BlockSpec((Cp, 9 * Cp), lambda t: (0, 0)),
            pl.BlockSpec((Cp, 1), lambda t: (0, 0)),
            pl.BlockSpec((Cp, 9 * Cp), lambda t: (0, 0)),
            pl.BlockSpec((Cp, 1), lambda t: (0, 0)),
        ],
        out_specs=pl.BlockSpec((1, Cp, L), lambda t: (t, 0, 0)),
        compiler_params=pltpu.CompilerParams(
            dimension_semantics=("parallel",)),
    )(x3, masks, w1m, b1c, w2m, b2c)

    # (NT, Cp, L) -> (N, C, H, W), dropping the channel padding.
    out = out.reshape(NT, Cp, npt, HW).transpose(0, 2, 1, 3).reshape(N, Cp, H, W)
    return out[:, :C]


def residual_block_ref(x, w1, b1, w2, b2):
    """Pure-JAX reference matching the PyTorch module (NCHW / OIHW)."""
    dn = ("NCHW", "OIHW", "NCHW")
    out = lax.conv_general_dilated(x, w1, (1, 1), "SAME", dimension_numbers=dn)
    out = jnp.maximum(out + b1[None, :, None, None], 0.0)
    out = lax.conv_general_dilated(out, w2, (1, 1), "SAME", dimension_numbers=dn)
    out = out + b2[None, :, None, None] + x
    return jnp.maximum(out, 0.0)


if __name__ == "__main__":
    N, C, H, W = 2, 4, 16, 16
    key = jax.random.PRNGKey(0)
    kx, k1, k2, k3, k4 = jax.random.split(key, 5)

    x = jax.random.normal(kx, (N, C, H, W), dtype=jnp.float32)
    # Deterministic synthetic parameters (PyTorch conv weight layout: OIHW).
    w1 = 0.1 * jax.random.normal(k1, (C, C, 3, 3), dtype=jnp.float32)
    b1 = 0.1 * jax.random.normal(k2, (C,), dtype=jnp.float32)
    w2 = 0.1 * jax.random.normal(k3, (C, C, 3, 3), dtype=jnp.float32)
    b2 = 0.1 * jax.random.normal(k4, (C,), dtype=jnp.float32)

    ref = residual_block_ref(x, w1, b1, w2, b2)

    # Strict check on the f32-operand path (exact module numerics modulo
    # MXU accumulation order).
    out_f32 = jax.block_until_ready(
        residual_block_pallas(x, w1, b1, w2, b2, mxu_dtype=jnp.float32))
    assert out_f32.shape == (N, C, H, W)
    assert jnp.max(jnp.abs(out_f32 - ref)) < 1e-3, "f32 path mismatch vs reference"

    # Default (bf16-operand) path: loose tolerance for operand rounding; real
    # bugs (wrong tap/mask/residual) produce O(0.3+) errors.
    out_bf16 = jax.block_until_ready(residual_block_pallas(x, w1, b1, w2, b2))
    assert out_bf16.shape == (N, C, H, W)
    assert jnp.max(jnp.abs(out_bf16 - ref)) < 1e-1, "bf16 path mismatch vs reference"

    print("KERNEL_OK")
</pallas_src>

<mosaic_0001>
module attributes {stable_mosaic.version = 11 : i64} {
  func.func @resblock_kernel(%arg0: i32, %arg1: memref<1x8x256xf32, #tpu.memory_space<vmem>>, %arg2: memref<8x256xf32, #tpu.memory_space<vmem>>, %arg3: memref<8x72xf32, #tpu.memory_space<vmem>>, %arg4: memref<8x1xf32, #tpu.memory_space<vmem>>, %arg5: memref<8x72xf32, #tpu.memory_space<vmem>>, %arg6: memref<8x1xf32, #tpu.memory_space<vmem>>, %arg7: memref<1x8x256xf32, #tpu.memory_space<vmem>>) attributes {dimension_semantics = [#tpu.dimension_semantics<parallel>], iteration_bounds = array<i64: 2>, scalar_prefetch = 0 : i64, scratch_operands = 0 : i64, tpu.core_type = #tpu.core_type<tc>, window_params = [{transform_indices = @transform_0, window_bounds = array<i64: 1, 8, 256>}, {pipeline_mode = #tpu.pipeline_mode<synchronous>, transform_indices = @transform_1, window_bounds = array<i64: 8, 256>}, {pipeline_mode = #tpu.pipeline_mode<synchronous>, transform_indices = @transform_2, window_bounds = array<i64: 8, 72>}, {pipeline_mode = #tpu.pipeline_mode<synchronous>, transform_indices = @transform_3, window_bounds = array<i64: 8, 1>}, {pipeline_mode = #tpu.pipeline_mode<synchronous>, transform_indices = @transform_4, window_bounds = array<i64: 8, 72>}, {pipeline_mode = #tpu.pipeline_mode<synchronous>, transform_indices = @transform_5, window_bounds = array<i64: 8, 1>}, {transform_indices = @transform_6, window_bounds = array<i64: 1, 8, 256>}]} {
    %c0 = arith.constant 0 : index
    %c0_0 = arith.constant 0 : index
    %c0_1 = arith.constant 0 : index
    %0 = vector.load %arg1[%c0, %c0_0, %c0_1] : memref<1x8x256xf32, #tpu.memory_space<vmem>>, vector<1x8x256xf32>
    %1 = vector.shape_cast %0 : vector<1x8x256xf32> to vector<8x256xf32>
    %c0_2 = arith.constant 0 : index
    %c0_3 = arith.constant 0 : index
    %2 = vector.load %arg2[%c0_2, %c0_3] : memref<8x256xf32, #tpu.memory_space<vmem>>, vector<8x256xf32>
    %3 = vector.extract_strided_slice %2 {offsets = [0, 0], sizes = [1, 256], strides = [1, 1]} : vector<8x256xf32> to vector<1x256xf32>
    %4 = vector.extract_strided_slice %2 {offsets = [1, 0], sizes = [1, 256], strides = [1, 1]} : vector<8x256xf32> to vector<1x256xf32>
    %5 = vector.extract_strided_slice %2 {offsets = [2, 0], sizes = [1, 256], strides = [1, 1]} : vector<8x256xf32> to vector<1x256xf32>
    %6 = vector.extract_strided_slice %2 {offsets = [3, 0], sizes = [1, 256], strides = [1, 1]} : vector<8x256xf32> to vector<1x256xf32>
    %7 = vector.extract_strided_slice %2 {offsets = [4, 0], sizes = [1, 256], strides = [1, 1]} : vector<8x256xf32> to vector<1x256xf32>
    %8 = vector.extract_strided_slice %2 {offsets = [5, 0], sizes = [1, 256], strides = [1, 1]} : vector<8x256xf32> to vector<1x256xf32>
    %9 = vector.extract_strided_slice %2 {offsets = [6, 0], sizes = [1, 256], strides = [1, 1]} : vector<8x256xf32> to vector<1x256xf32>
    %10 = vector.extract_strided_slice %2 {offsets = [7, 0], sizes = [1, 256], strides = [1, 1]} : vector<8x256xf32> to vector<1x256xf32>
    %c0_4 = arith.constant 0 : index
    %c0_5 = arith.constant 0 : index
    %11 = vector.load %arg3[%c0_4, %c0_5] : memref<8x72xf32, #tpu.memory_space<vmem>>, vector<8x72xf32>
    %c17_i32 = arith.constant 17 : i32
    %12 = tpu.dynamic_rotate %1 by %c17_i32 dim 1 : vector<8x256xf32>, i32 -> vector<8x256xf32>
    %13 = vector.broadcast %3 : vector<1x256xf32> to vector<8x256xf32>
    %14 = arith.mulf %12, %13 : vector<8x256xf32>
    %c16_i32 = arith.constant 16 : i32
    %15 = tpu.dynamic_rotate %1 by %c16_i32 dim 1 : vector<8x256xf32>, i32 -> vector<8x256xf32>
    %16 = vector.broadcast %4 : vector<1x256xf32> to vector<8x256xf32>
    %17 = arith.mulf %15, %16 : vector<8x256xf32>
    %c15_i32 = arith.constant 15 : i32
    %18 = tpu.dynamic_rotate %1 by %c15_i32 dim 1 : vector<8x256xf32>, i32 -> vector<8x256xf32>
    %19 = vector.broadcast %5 : vector<1x256xf32> to vector<8x256xf32>
    %20 = arith.mulf %18, %19 : vector<8x256xf32>
    %c1_i32 = arith.constant 1 : i32
    %21 = tpu.dynamic_rotate %1 by %c1_i32 dim 1 : vector<8x256xf32>, i32 -> vector<8x256xf32>
    %22 = vector.broadcast %6 : vector<1x256xf32> to vector<8x256xf32>
    %23 = arith.mulf %21, %22 : vector<8x256xf32>
    %c255_i32 = arith.constant 255 : i32
    %24 = tpu.dynamic_rotate %1 by %c255_i32 dim 1 : vector<8x256xf32>, i32 -> vector<8x256xf32>
    %25 = vector.broadcast %7 : vector<1x256xf32> to vector<8x256xf32>
    %26 = arith.mulf %24, %25 : vector<8x256xf32>
    %c241_i32 = arith.constant 241 : i32
    %27 = tpu.dynamic_rotate %1 by %c241_i32 dim 1 : vector<8x256xf32>, i32 -> vector<8x256xf32>
    %28 = vector.broadcast %8 : vector<1x256xf32> to vector<8x256xf32>
    %29 = arith.mulf %27, %28 : vector<8x256xf32>
    %c240_i32 = arith.constant 240 : i32
    %30 = tpu.dynamic_rotate %1 by %c240_i32 dim 1 : vector<8x256xf32>, i32 -> vector<8x256xf32>
    %31 = vector.broadcast %9 : vector<1x256xf32> to vector<8x256xf32>
    %32 = arith.mulf %30, %31 : vector<8x256xf32>
    %c239_i32 = arith.constant 239 : i32
    %33 = tpu.dynamic_rotate %1 by %c239_i32 dim 1 : vector<8x256xf32>, i32 -> vector<8x256xf32>
    %34 = vector.broadcast %10 : vector<1x256xf32> to vector<8x256xf32>
    %35 = arith.mulf %33, %34 : vector<8x256xf32>
    %36 = tpu.concatenate %14, %17, %20, %23, %1, %26, %29, %32, %35 in 0 : vector<8x256xf32>, vector<8x256xf32>, vector<8x256xf32>, vector<8x256xf32>, vector<8x256xf32>, vector<8x256xf32>, vector<8x256xf32>, vector<8x256xf32>, vector<8x256xf32> -> vector<72x256xf32>
    %cst = arith.constant dense<0.000000e+00> : vector<8x256xf32>
    %37 = tpu.matmul %11, %36, %cst {dimension_numbers = #tpu.dot_dimension_numbers<[1], [0], [0], [1], [0, 0, 1, 1], [], []>} : vector<8x72xf32>, vector<72x256xf32>, vector<8x256xf32> -> vector<8x256xf32>
    %c0_6 = arith.constant 0 : index
    %c0_7 = arith.constant 0 : index
    %38 = vector.load %arg4[%c0_6, %c0_7] : memref<8x1xf32, #tpu.memory_space<vmem>>, vector<8x1xf32>
    %39 = vector.broadcast %38 : vector<8x1xf32> to vector<8x256xf32>
    %40 = arith.addf %37, %39 : vector<8x256xf32>
    %cst_8 = arith.constant 0.000000e+00 : f32
    %41 = vector.broadcast %cst_8 : f32 to vector<8x256xf32>
    %42 = arith.maximumf %40, %41 : vector<8x256xf32>
    %c0_9 = arith.constant 0 : index
    %c0_10 = arith.constant 0 : index
    %43 = vector.load %arg5[%c0_9, %c0_10] : memref<8x72xf32, #tpu.memory_space<vmem>>, vector<8x72xf32>
    %c17_i32_11 = arith.constant 17 : i32
    %44 = tpu.dynamic_rotate %42 by %c17_i32_11 dim 1 : vector<8x256xf32>, i32 -> vector<8x256xf32>
    %45 = vector.broadcast %3 : vector<1x256xf32> to vector<8x256xf32>
    %46 = arith.mulf %44, %45 : vector<8x256xf32>
    %c16_i32_12 = arith.constant 16 : i32
    %47 = tpu.dynamic_rotate %42 by %c16_i32_12 dim 1 : vector<8x256xf32>, i32 -> vector<8x256xf32>
    %48 = vector.broadcast %4 : vector<1x256xf32> to vector<8x256xf32>
    %49 = arith.mulf %47, %48 : vector<8x256xf32>
    %c15_i32_13 = arith.constant 15 : i32
    %50 = tpu.dynamic_rotate %42 by %c15_i32_13 dim 1 : vector<8x256xf32>, i32 -> vector<8x256xf32>
    %51 = vector.broadcast %5 : vector<1x256xf32> to vector<8x256xf32>
    %52 = arith.mulf %50, %51 : vector<8x256xf32>
    %c1_i32_14 = arith.constant 1 : i32
    %53 = tpu.dynamic_rotate %42 by %c1_i32_14 dim 1 : vector<8x256xf32>, i32 -> vector<8x256xf32>
    %54 = vector.broadcast %6 : vector<1x256xf32> to vector<8x256xf32>
    %55 = arith.mulf %53, %54 : vector<8x256xf32>
    %c255_i32_15 = arith.constant 255 : i32
    %56 = tpu.dynamic_rotate %42 by %c255_i32_15 dim 1 : vector<8x256xf32>, i32 -> vector<8x256xf32>
    %57 = vector.broadcast %7 : vector<1x256xf32> to vector<8x256xf32>
    %58 = arith.mulf %56, %57 : vector<8x256xf32>
    %c241_i32_16 = arith.constant 241 : i32
    %59 = tpu.dynamic_rotate %42 by %c241_i32_16 dim 1 : vector<8x256xf32>, i32 -> vector<8x256xf32>
    %60 = vector.broadcast %8 : vector<1x256xf32> to vector<8x256xf32>
    %61 = arith.mulf %59, %60 : vector<8x256xf32>
    %c240_i32_17 = arith.constant 240 : i32
    %62 = tpu.dynamic_rotate %42 by %c240_i32_17 dim 1 : vector<8x256xf32>, i32 -> vector<8x256xf32>
    %63 = vector.broadcast %9 : vector<1x256xf32> to vector<8x256xf32>
    %64 = arith.mulf %62, %63 : vector<8x256xf32>
    %c239_i32_18 = arith.constant 239 : i32
    %65 = tpu.dynamic_rotate %42 by %c239_i32_18 dim 1 : vector<8x256xf32>, i32 -> vector<8x256xf32>
    %66 = vector.broadcast %10 : vector<1x256xf32> to vector<8x256xf32>
    %67 = arith.mulf %65, %66 : vector<8x256xf32>
    %68 = tpu.concatenate %46, %49, %52, %55, %42, %58, %61, %64, %67 in 0 : vector<8x256xf32>, vector<8x256xf32>, vector<8x256xf32>, vector<8x256xf32>, vector<8x256xf32>, vector<8x256xf32>, vector<8x256xf32>, vector<8x256xf32>, vector<8x256xf32> -> vector<72x256xf32>
    %cst_19 = arith.constant dense<0.000000e+00> : vector<8x256xf32>
    %69 = tpu.matmul %43, %68, %cst_19 {dimension_numbers = #tpu.dot_dimension_numbers<[1], [0], [0], [1], [0, 0, 1, 1], [], []>} : vector<8x72xf32>, vector<72x256xf32>, vector<8x256xf32> -> vector<8x256xf32>
    %c0_20 = arith.constant 0 : index
    %c0_21 = arith.constant 0 : index
    %70 = vector.load %arg6[%c0_20, %c0_21] : memref<8x1xf32, #tpu.memory_space<vmem>>, vector<8x1xf32>
    %71 = vector.broadcast %70 : vector<8x1xf32> to vector<8x256xf32>
    %72 = arith.addf %69, %71 : vector<8x256xf32>
    %73 = arith.addf %72, %1 : vector<8x256xf32>
    %cst_22 = arith.constant 0.000000e+00 : f32
    %74 = vector.broadcast %cst_22 : f32 to vector<8x256xf32>
    %75 = arith.maximumf %73, %74 : vector<8x256xf32>
    %c0_23 = arith.constant 0 : index
    %c0_24 = arith.constant 0 : index
    %c0_25 = arith.constant 0 : index
    %76 = vector.load %arg7[%c0_23, %c0_24, %c0_25] : memref<1x8x256xf32, #tpu.memory_space<vmem>>, vector<1x8x256xf32>
    %77 = vector.shape_cast %76 : vector<1x8x256xf32> to vector<8x256xf32>
    %78 = vector.shape_cast %75 : vector<8x256xf32> to vector<1x8x256xf32>
    tpu.vector_store %arg7[%c0_23, %c0_24, %c0_25], %78 {strides = array<i32>} : memref<1x8x256xf32, #tpu.memory_space<vmem>>, vector<1x8x256xf32>,
    return
  }
  func.func @transform_0(%arg0: i32) -> (i32, i32, i32) {
    %c0_i32 = arith.constant 0 : i32
    %c0_i32_0 = arith.constant 0 : i32
    %c0_i32_1 = arith.constant 0 : i32
    return %arg0, %c0_i32, %c0_i32_0 : i32, i32, i32
  }
  func.func @transform_1(%arg0: i32) -> (i32, i32) {
    %c0_i32 = arith.constant 0 : i32
    %c0_i32_0 = arith.constant 0 : i32
    %c0_i32_1 = arith.constant 0 : i32
    return %c0_i32, %c0_i32_0 : i32, i32
  }
  func.func @transform_2(%arg0: i32) -> (i32, i32) {
    %c0_i32 = arith.constant 0 : i32
    %c0_i32_0 = arith.constant 0 : i32
    %c0_i32_1 = arith.constant 0 : i32
    return %c0_i32, %c0_i32_0 : i32, i32
  }
  func.func @transform_3(%arg0: i32) -> (i32, i32) {
    %c0_i32 = arith.constant 0 : i32
    %c0_i32_0 = arith.constant 0 : i32
    %c0_i32_1 = arith.constant 0 : i32
    return %c0_i32, %c0_i32_0 : i32, i32
  }
  func.func @transform_4(%arg0: i32) -> (i32, i32) {
    %c0_i32 = arith.constant 0 : i32
    %c0_i32_0 = arith.constant 0 : i32
    %c0_i32_1 = arith.constant 0 : i32
    return %c0_i32, %c0_i32_0 : i32, i32
  }
  func.func @transform_5(%arg0: i32) -> (i32, i32) {
    %c0_i32 = arith.constant 0 : i32
    %c0_i32_0 = arith.constant 0 : i32
    %c0_i32_1 = arith.constant 0 : i32
    return %c0_i32, %c0_i32_0 : i32, i32
  }
  func.func @transform_6(%arg0: i32) -> (i32, i32, i32) {
    %c0_i32 = arith.constant 0 : i32
    %c0_i32_0 = arith.constant 0 : i32
    %c0_i32_1 = arith.constant 0 : i32
    return %arg0, %c0_i32, %c0_i32_0 : i32, i32, i32
  }
}

</mosaic_0001>

<bundles_post_ra>
// kernel: tpu_custom_call.1
= control target key start
LH: loop header
LB: loop body
LE: loop exit
PB: predicated region body
PF: predicated region fallthrough
CT: control target
= control target key end

     0   :  { %s1424_s0 = inlined_call_operand.hbm [shape: f32[2,8,256], index: 0, kind: input, shape index: {}]   ;;  %s1425_s1 = inlined_call_operand.vmem [shape: f32[8,256], index: 1, kind: input, shape index: {}]   ;;  %s1426_s2 = inlined_call_operand.hbm [shape: f32[8,72], index: 2, kind: input, shape index: {}]   ;;  %s1427_s3 = inlined_call_operand.vmem [shape: f32[8,1], index: 3, kind: input, shape index: {}]   ;;  %s1428_s4 = inlined_call_operand.vmem [shape: f32[8,72], index: 4, kind: input, shape index: {}]   ;;  %s1429_s5 = inlined_call_operand.vmem [shape: f32[8,1], index: 5, kind: input, shape index: {}]   ;;  %s1430_s6 = inlined_call_operand.hbm [shape: f32[2,8,256], index: 6, kind: output, shape index: {}]  }
   0x1   :  { %1435 = sst [smem:[#allocation11_spill]] %s1426_s2 }
   0x2   :  { %11 = vsyncpa [#allocation3], 0 }
   0x3   :  { %13 = vsyncpa [#allocation3 + $0x1], 0 }
   0x4   :  { %14 = vsyncpa [#allocation6], 0 }
   0x5   :  { %15 = vsyncpa [#allocation4], 0 }
   0x6   :  { %17 = vsyncpa [#allocation4 + $0x1], 0  ;;  %s1013_s21 = smov 0   ;;  %s1015_s22 = smov 0  }
   0x7   :  { %s1017_s23 = smov 0   ;;  %s1019_s24 = smov 0  }
   0x8 LB: > { %s1034_s25 = sadd.s32 4294967295, %s963_s24   ;;  %s753_s26 = sadd.s32 4294967294, %s963_s24   ;;  %s963_s24 = sphi %s1019_s24, %s1455_s24   ;;  %s959_s23 = sphi %s1017_s23, %s1454_s23   ;;  %s955_s22 = sphi %s1015_s22, %s1453_s22   ;;  %s951_s21 = sphi %s1013_s21, %s1452_s21  }
   0x9   : > { %p43_p0 = scmp.ne.s32.totalorder %s955_s22, %s951_s21  ;;  %p1431_p1 = scmp.eq.s32.totalorder %s1034_s25, 0 }
   0xa   : > { %p178_p3 = scmp.eq.s32.totalorder %s753_s26, 1  ;;  %p754_p5 = scmp.ge.s32.totalorder %s963_s24, 1 }
   0xb   : > { %p1043_p4 = por %p1431_p1, %p43_p0  ;;  %p185_p7 = scmp.lt.s32.totalorder %s963_s24, 3 }
   0xc   : > { %p1048_p6 = por %p178_p3, %p43_p0  ;;  %s965_s30 = smov [#allocation5]  }
   0xd   : > { %s1436_s27 = scalar_select %p1043_p4, 1, 0 }
   0xe   : > { %s1437_s28 = scalar_select %p1048_p6, 1, 0 }
   0xf   : > { %p1053_p8 = pnand %p754_p5, %p185_p7  ;;  %s201_s7 = sshll.u32 %s965_s30, 4  ;;  %s202_s7 = int_to_ptr.vmem [resolvable:$true] %s201_s7 }
  0x10   : > { %s1061_s8 = sadd.s32 1, %s963_s24   ;;  %s30_s12 = sadd.s32 1, %s959_s23 }
  0x11   : > { %s1438_s29 = scalar_select %p1053_p8, 1, 0 }
  0x12   : > { %p781_p10 = pneg %p1053_p8  ;;  %s27_s10 = ssub.s32 %s963_s24, %s1061_s8 }
  0x13   : > { %p1071_p12 = scmp.eq.s32.totalorder %s27_s10, 0  ;;  %p37_p13 = scmp.ne.s32.totalorder %s959_s23, %s955_s22 }
  0x14   : > { %p1065_p11 = pnand %p781_p10, %p1431_p1  ;;  %s852_s13 = scalar_lea.vmem %s202_s7, 128 }
  0x15   : > { %p853_p3 = scmp.ne.s32.totalorder %s202_s7, %s852_s13  ;;  %p860_p9 = scmp.lt.s32.totalorder %s202_s7, %s202_s7 }
  0x16   : > { %p843_p0 = pneg %p1065_p11  ;;  %p861_p2 = scmp.lt.s32.totalorder %s852_s13, %s852_s13 }
  0x18   : > { %p855_p5 = pnand %p853_p3, %p843_p0  ;;  %p862_p10 = por %p861_p2, %p860_p9 }
  0x1a   : > { %p856_p7 = pneg %p855_p5 }
  0x1c   : > { %p863_p1 = pnand %p862_p10, %p856_p7 }
  0x1e   : > { %866 = shalt.err (!%p863_p1)
}
  0x1f   : > { %s1441_s2 = sld [smem:[#allocation11_spill]]  ;;  %p38_p1 = scmp.eq.s32.totalorder %s963_s24, 0 }
  0x20   : > { %s1088_s16 = scalar_select %p1071_p12, %s959_s23, %s30_s12  }
  0x21   : > { %p1442_p2 = scmp.eq.s32.totalorder %s1034_s25, 1  ;;  %p794_p0 = scmp.lt.s32.totalorder %s963_s24, 2 }
  0x22   : > { %s221_s18 = sand.u32 1, %s959_s23   ;;  %p39_p3 = por %p38_p1, %p37_p13 }
  0x23   : > { %p1096_p9 = por %p1442_p2, %p37_p13  ;;  %s757_s19 = sshll.u32 %s221_s18, 4 }
  0x24   : > { %s771_s20 = sshll.u32 %s963_s24, 8  ;;  %s225_s9 = scalar_lea.vmem [#allocation2], %s757_s19 }
  0x25   : > { %784 = dma.hbm_to_vmem [thread:$0]  (!%p1065_p11), %s1441_s2, 128, %s202_s7, [#allocation6]  }
  0x26   : > { %s1443_s17 = scalar_select %p1096_p9, 1, 0 }
  0x27   : > { %s1109_s7 = scalar_lea.hbm %s1424_s0, %s771_s20  ;;  %s233_s10 = sshll.u32 %s225_s9, 4  ;;  %s234_s10 = int_to_ptr.vmem [resolvable:$true] %s233_s10 }
  0x28   : > { %p1111_p11 = pnand %p794_p0, %p39_p3  ;;  %s222_s12 = scalar_lea.sflag [#allocation3], %s221_s18 }
  0x29   : > { %s867_s13 = scalar_lea.hbm %s1109_s7, 256  ;;  %s872_s20 = scalar_lea.hbm %s1424_s0, 512 }
  0x2a   : > { %p868_p12 = scmp.ne.s32.totalorder %s1109_s7, %s867_s13  ;;  %p869_p13 = pneg %p1111_p11 }
  0x2b   : > { %p873_p10 = scmp.lt.s32.totalorder %s1109_s7, %s1424_s0  ;;  %p874_p1 = scmp.lt.s32.totalorder %s872_s20, %s867_s13 }
  0x2c   : > { %p870_p5 = pnand %p869_p13, %p868_p12 }
  0x2d   : > { %p875_p2 = por %p874_p1, %p873_p10 }
  0x2e   : > { %p871_p7 = pneg %p870_p5 }
  0x30   : > { %p876_p0 = pnand %p875_p2, %p871_p7 }
  0x32   : > { %879 = shalt.err (!%p876_p0)
}
  0x33   : > { %s880_s30 = scalar_lea.vmem %s234_s10, 256  ;;  %s966_s18 = smov [#allocation2]  }
  0x34   : > { %p881_p3 = scmp.ne.s32.totalorder %s234_s10, %s880_s30  ;;  %s885_s9 = sshll.u32 %s966_s18, 4  ;;  %s886_s9 = int_to_ptr.vmem [resolvable:$false] %s885_s9 }
  0x35   : > { %s887_s2 = scalar_lea.vmem %s886_s9, 512  ;;  %p888_p12 = scmp.lt.s32.totalorder %s234_s10, %s886_s9 }
  0x36   : > { %p883_p6 = pnand %p881_p3, %p869_p13  ;;  %p889_p5 = scmp.lt.s32.totalorder %s887_s2, %s880_s30 }
  0x38   : > { %p884_p9 = pneg %p883_p6  ;;  %p890_p4 = por %p889_p5, %p888_p12 }
  0x3a   : > { %p891_p8 = pnand %p890_p4, %p884_p9 }
  0x3c   : > { %894 = shalt.err (!%p891_p8)
}
  0x3d   : > { %788 = dma.hbm_to_vmem [thread:$0]  (!%p1111_p11), %s1109_s7, 256, %s234_s10, %s222_s12  }
  0x3e   : > { %p1445_p7 = scmp.ne.s32.totalorder %s1438_s29, 0 }
  0x3f   : > { %s1132_s13 = sand.u32 (!%p1445_p7), 1, %s955_s22   ;;  %p1446_p4 = scmp.ne.s32.totalorder (!%p1445_p7), %s1436_s27, 0 }
  0x40   : > { %242 = sbr.rel (%p1445_p7) target bundleno = 785 (0x311), region = 44  ;;  %s761_s14 = sshll.u32 (!%p1445_p7), %s1132_s13, 4 }
  0x41   : > { %s245_s15 = scalar_lea.sflag (!%p1445_p7), [#allocation3], %s1132_s13  ;;  %s248_s2 = scalar_lea.vmem (!%p1445_p7), [#allocation2], %s761_s14 }
  0x45   : > { %938 = dma.done.wait (%p1446_p4), %s245_s15, 256  }
  0x46   : > { %940 = vsyncadd (%p1446_p4), %s245_s15, 4294967040  ;;  %p1447_p6 = scmp.eq.s32.totalorder %s1034_s25, 0 }
  0x48   : > { %942 = dma.done.wait (%p1447_p6), [#allocation6], 128   ;;  %p1448_p8 = pmov %p1447_p6 }
  0x49   : > { %v1146_v0 = vld [vmem:[%s248_s2] sm:$0xff]  ;;  %s967_s29 = smov 112   ;;  %s968_s7 = smov 111   ;;  %v1152_v1 = vld [vmem:[%s248_s2 + $0x8] sm:$0xff]  ;;  %v972_v2 = vmov 0.0   ;;  %v974_v3 = vmov 0   ;;  %v290_v5 = vlaneseq }
  0x4a   : > { %944 = vsyncadd (%p1448_p8), [#allocation6], 4294967168  ;;  %390 = vrot.lane.b32.xlu1 %v1146_v0, %s967_s29  ;;  %407 = vrot.lane.b32.xlu0 %v1146_v0, %s968_s7  ;;  %s969_s27 = smov 113   ;;  %s970_s10 = smov 127   ;;  %v424_v4 = vld [vmem:[%s1427_s3] sm:$0xff]  ;;  %v1198_v10 = vld [vmem:[%s1425_s1 + $0x8] sm:$0xff] }
  0x4b   : > { %s971_s11 = smov 1   ;;  %498 = vmatprep.mubr.f32.mxu0 %v972_v2  ;;  %645 = vmatprep.mubr.f32.mxu1 %v972_v2  ;;  %s973_s12 = smov 15   ;;  %v1185_v6 = vshrl.u32 %v290_v5, 7  ;;  %v1187_v7 = vand.u32 127, %v290_v5  ;;  %v1193_v9 = vld [vmem:[%s1425_s1] sm:$0xff]  ;;  %vm430_vm8 = vcmask 588800  }
  0x4c   : > { %840 = vset.pattern.permute.xlu0 %v974_v3  ;;  %s975_s20 = smov 16   ;;  %s976_s26 = smov 17  }
  0x4d   : > { %v416_v8 = vsub.s32 7, %v1185_v6  ;;  %v399_v13 = vsub.s32 6, %v1185_v6  ;;  %v382_v14 = vsub.s32 5, %v1185_v6  ;;  %vm394_vm0 = vcmp.lt.s32.totalorder %v1187_v7, 112  ;;  %s659_s18 = scalar_lea.sflag [#allocation4], %s1132_s13  ;;  %p1449_p11 = scmp.ne.s32.totalorder %s1443_s17, 0 }
  0x4e   : > { %392 = vrot.lane.b32.xlu1 %v1152_v1, %s967_s29  ;;  %409 = vrot.lane.b32.xlu0 %v1152_v1, %s968_s7  ;;  %vm411_vm1 = vcmp.lt.s32.totalorder %v1187_v7, 111  ;;  %vm377_vm2 = vcmp.lt.s32.totalorder %v1187_v7, 113  ;;  %v365_v21 = vsub.s32 4, %v1185_v6  ;;  %vm360_vm3 = vcmp.lt.s32.totalorder %v1187_v7, 127 }
  0x4f   : > { %v1205_v15 = vrot.slane %v1198_v10, %v416_v8  ;;  %v1208_v16 = vrot.slane %v1193_v9, %v416_v8  ;;  %v1211_v17 = vrot.slane %v1193_v9, %v399_v13  ;;  %v1214_v18 = vrot.slane %v1198_v10, %v399_v13 }
  0x50   : > { %v1225_v25 = vrot.slane %v1193_v9, %v382_v14  ;;  %v1231_v28 = vrot.slane %v1198_v10, %v382_v14  ;;  %v348_v36 = vsub.s32 3, %v1185_v6  ;;  %v1245_v39 = vrot.slane %v1193_v9, %v365_v21 }
  0x51   : > { %v1248_v40 = vrot.slane %v1198_v10, %v365_v21  ;;  %vm343_vm4 = vcmp.lt.s32.totalorder %v1187_v7, 1  ;;  %v331_v49 = vsub.s32 2, %v1185_v6  ;;  %vm326_vm5 = vcmp.lt.s32.totalorder %v1187_v7, 15 }
  0x52   : > { %375 = vrot.lane.b32.xlu1 %v1152_v1, %s969_s27  ;;  %373 = vrot.lane.b32.xlu0 %v1146_v0, %s969_s27  ;;  %v1256_v45 = vrot.slane %v1193_v9, %v348_v36  ;;  %v1261_v48 = vrot.slane %v1198_v10, %v348_v36  ;;  %v314_v54 = vsub.s32 1, %v1185_v6  ;;  %vm309_vm6 = vcmp.lt.s32.totalorder %v1187_v7, 16 }
  0x53   : > { %v1274_v57 = vrot.slane %v1193_v9, %v331_v49  ;;  %v1277_v58 = vrot.slane %v1198_v10, %v331_v49  ;;  %v297_v5 = vsub.s32 0, %v1185_v6  ;;  %vm292_vm7 = vcmp.lt.s32.totalorder %v1187_v7, 17 }
  0x54   : > { %v1286_v63 = vrot.slane %v1193_v9, %v314_v54 }
  0x55   : > { %v1305_v6 = vrot.slane %v1198_v10, %v297_v5 }
  0x56   : > { %358 = vrot.lane.b32.xlu1 %v1152_v1, %s970_s10  ;;  %356 = vrot.lane.b32.xlu0 %v1146_v0, %s970_s10 }
  0x5a   : > { %341 = vrot.lane.b32.xlu1 %v1152_v1, %s971_s11  ;;  %339 = vrot.lane.b32.xlu0 %v1146_v0, %s971_s11 }
  0x5e   : > { %324 = vrot.lane.b32.xlu1 %v1152_v1, %s973_s12  ;;  %322 = vrot.lane.b32.xlu0 %v1146_v0, %s973_s12 }
  0x62   : > { %307 = vrot.lane.b32.xlu1 %v1152_v1, %s975_s20  ;;  %305 = vrot.lane.b32.xlu0 %v1146_v0, %s975_s20 }
  0x66   : > { %288 = vrot.lane.b32.xlu1 %v1152_v1, %s976_s26  ;;  %286 = vrot.lane.b32.xlu0 %v1146_v0, %s976_s26 }
  0x6a   : > { %427 = vperm.xlu0 %840, %v424_v4   ;;  %v1291_v4 = vrot.slane %v1198_v10, %v314_v54 }
  0xbc   : > { %v391_v11 = vpop.permute.xlu1 %390  ;;  %v408_v12 = vpop.permute.xlu0 %407 }
  0xc0   : > { %v393_v19 = vpop.permute.xlu1 %392  ;;  %v410_v20 = vpop.permute.xlu0 %409 }
  0xc1   : > { %v396_v22 = vsel %vm394_vm0, %v393_v19, %v391_v11  ;;  %v412_v23 = vsel %vm411_vm1, %v408_v12, %v410_v20  ;;  %v413_v24 = vsel %vm411_vm1, %v410_v20, %v408_v12  ;;  %v395_v26 = vsel %vm394_vm0, %v391_v11, %v393_v19 }
  0xc2   : > { %v423_v27 = vmul.f32 %v1205_v15, %v413_v24  ;;  %v422_v29 = vmul.f32 %v1208_v16, %v412_v23  ;;  %v406_v30 = vmul.f32 %v1214_v18, %v396_v22  ;;  %v405_v33 = vmul.f32 %v1211_v17, %v395_v26 }
  0xc3   : > { %v1302_v20 = vrot.slane %v1193_v9, %v297_v5 }
  0xc4   : > { %v376_v31 = vpop.permute.xlu1 %375  ;;  %448 = vmatprep.subr.mxu0 %v423_v27  ;;  %v374_v32 = vpop.permute.xlu0 %373 }
  0xc5   : > { %v378_v34 = vsel %vm377_vm2, %v374_v32, %v376_v31  ;;  %v379_v35 = vsel %vm377_vm2, %v376_v31, %v374_v32  ;;  %449 = vmatpush1.msra.mxu0 %v422_v29  ;;  %v285_v29 = vld [vmem:[#allocation5] sm:$0xff] }
  0xc6   : > { %v388_v37 = vmul.f32 %v1225_v25, %v378_v34  ;;  %v389_v38 = vmul.f32 %v1231_v28, %v379_v35  ;;  %450 = vmatprep.subr.mxu0 %v406_v30  ;;  %v572_v35 = vld [vmem:[%s1429_s5] sm:$0xff] }
  0xc7   : > { %451 = vmatpush1.msra.mxu0 %v405_v33 }
  0xc8   : > { %v359_v41 = vpop.permute.xlu1 %358  ;;  %452 = vmatprep.subr.mxu0 %v389_v38  ;;  %v357_v42 = vpop.permute.xlu0 %356 }
  0xc9   : > { %v361_v43 = vsel %vm360_vm3, %v357_v42, %v359_v41  ;;  %v362_v44 = vsel %vm360_vm3, %v359_v41, %v357_v42  ;;  %453 = vmatpush1.msra.mxu0 %v388_v37 }
  0xca   : > { %v371_v46 = vmul.f32 %v1245_v39, %v361_v43  ;;  %v372_v47 = vmul.f32 %v1248_v40, %v362_v44 }
  0xcc   : > { %v342_v50 = vpop.permute.xlu1 %341  ;;  %454 = vmatprep.subr.mxu0 %v372_v47  ;;  %v340_v51 = vpop.permute.xlu0 %339 }
  0xcd   : > { %v344_v52 = vsel %vm343_vm4, %v340_v51, %v342_v50  ;;  %v345_v53 = vsel %vm343_vm4, %v342_v50, %v340_v51  ;;  %455 = vmatpush1.msra.mxu0 %v371_v46 }
  0xce   : > { %v354_v55 = vmul.f32 %v1256_v45, %v345_v53  ;;  %v355_v56 = vmul.f32 %v1261_v48, %v344_v52  ;;  %456 = vmatprep.subr.mxu0 %v1152_v1 }
  0xcf   : > { %457 = vmatpush1.msra.mxu0 %v1146_v0 }
  0xd0   : > { %v325_v59 = vpop.permute.xlu1 %324  ;;  %458 = vmatprep.subr.mxu0 %v355_v56  ;;  %v323_v60 = vpop.permute.xlu0 %322 }
  0xd1   : > { %v327_v61 = vsel %vm326_vm5, %v323_v60, %v325_v59  ;;  %v328_v62 = vsel %vm326_vm5, %v325_v59, %v323_v60  ;;  %459 = vmatpush1.msra.mxu0 %v354_v55 }
  0xd2   : > { %v337_v2 = vmul.f32 %v1274_v57, %v328_v62  ;;  %v338_v3 = vmul.f32 %v1277_v58, %v327_v61 }
  0xd4   : > { %v308_v8 = vpop.permute.xlu1 %307  ;;  %460 = vmatprep.subr.mxu0 %v338_v3  ;;  %v306_v11 = vpop.permute.xlu0 %305 }
  0xd5   : > { %v310_v12 = vsel %vm309_vm6, %v306_v11, %v308_v8  ;;  %v311_v13 = vsel %vm309_vm6, %v308_v8, %v306_v11  ;;  %461 = vmatpush1.msra.mxu0 %v337_v2 }
  0xd6   : > { %v320_v14 = vmul.f32 %v1286_v63, %v311_v13  ;;  %v321_v19 = vmul.f32 %v1291_v4, %v310_v12 }
  0xd8   : > { %v289_v21 = vpop.permute.xlu1 %288  ;;  %462 = vmatprep.subr.mxu0 %v321_v19  ;;  %v287_v22 = vpop.permute.xlu0 %286 }
  0xd9   : > { %v293_v23 = vsel %vm292_vm7, %v287_v22, %v289_v21  ;;  %v294_v24 = vsel %vm292_vm7, %v289_v21, %v287_v22  ;;  %463 = vmatpush1.msra.mxu0 %v320_v14 }
  0xda   : > { %v303_v26 = vmul.f32 %v1302_v20, %v294_v24  ;;  %v304_v27 = vmul.f32 %v1305_v6, %v293_v23 }
  0xdc   : > { %464 = vmatprep.subr.mxu0 %v304_v27 }
  0xdd   : > { %465 = vmatpush1.msra.mxu0 %v303_v26 }
  0xde   : > { %764 = vmatmul.mubr.msk.f32.vlgmr.msra.gmra.mxu0 %vm430_vm8, %v285_v29 }
  0xe5   : > { %v428_v9 = vpop.permute.xlu0 %427 }
 0x19e   : > { %v500_v10 = vpop.f32.mrf.mxu0 }
 0x19f   : > { %v501_v30 = vadd.f32 %v500_v10, %v428_v9 }
 0x1a0   : > { %v502_v31 = vpop.f32.mrf.mxu0 }
 0x1a1   : > { %v505_v32 = vmax.f32 %v501_v30, 0.0  ;;  %v503_v33 = vadd.f32 %v502_v31, %v428_v9 }
 0x1a3   : > { %556 = vrot.lane.b32.xlu0 %v505_v32, %s967_s29  ;;  %564 = vrot.lane.b32.xlu1 %v505_v32, %s968_s7  ;;  %v506_v34 = vmax.f32 %v503_v33, 0.0 }
 0x1a7   : > { %548 = vrot.lane.b32.xlu0 %v505_v32, %s969_s27  ;;  %566 = vrot.lane.b32.xlu1 %v506_v34, %s968_s7 }
 0x1ab   : > { %540 = vrot.lane.b32.xlu0 %v505_v32, %s970_s10  ;;  %558 = vrot.lane.b32.xlu1 %v506_v34, %s967_s29 }
 0x1af   : > { %532 = vrot.lane.b32.xlu0 %v505_v32, %s971_s11  ;;  %550 = vrot.lane.b32.xlu1 %v506_v34, %s969_s27 }
 0x1b3   : > { %524 = vrot.lane.b32.xlu0 %v505_v32, %s973_s12  ;;  %542 = vrot.lane.b32.xlu1 %v506_v34, %s970_s10  ;;  %s772_s10 = sshll.u32 %s1034_s25, 8  ;;  %s977_s25 = smov [#allocation7]  }
 0x1b4   : > { %s671_s30 = scalar_lea.hbm %s1430_s6, %s772_s10 }
 0x1b7   : > { %516 = vrot.lane.b32.xlu0 %v505_v32, %s975_s20  ;;  %534 = vrot.lane.b32.xlu1 %v506_v34, %s971_s11  ;;  %s280_s11 = scalar_lea.vmem [#allocation7], %s761_s14  ;;  %s899_s14 = sshll.u32 %s977_s25, 4  ;;  %s900_s14 = int_to_ptr.vmem [resolvable:$false] %s899_s14 }
 0x1b8   : > { %s901_s15 = scalar_lea.vmem %s900_s14, 512 }
 0x1bb   : > { %508 = vrot.lane.b32.xlu0 %v505_v32, %s976_s26  ;;  %526 = vrot.lane.b32.xlu1 %v506_v34, %s973_s12  ;;  %s673_s12 = sshll.u32 %s280_s11, 4  ;;  %s674_s12 = int_to_ptr.vmem [resolvable:$true] %s673_s12 }
 0x1bc   : > { %s895_s9 = scalar_lea.vmem %s674_s12, 256  ;;  %p902_p1 = scmp.lt.s32.totalorder %s674_s12, %s900_s14 }
 0x1bd   : > { %p896_p9 = scmp.ne.s32.totalorder %s674_s12, %s895_s9  ;;  %p903_p2 = scmp.lt.s32.totalorder %s901_s15, %s895_s9 }
 0x1bf   : > { %575 = vperm.xlu0 %840, %v572_v35   ;;  %518 = vrot.lane.b32.xlu1 %v506_v34, %s975_s20  ;;  %p897_p13 = pnand %p896_p9, %p1449_p11  ;;  %p904_p0 = por %p903_p2, %p902_p1 }
 0x1c1   : > { %p898_p10 = pneg %p897_p13 }
 0x1c3   : > { %510 = vrot.lane.b32.xlu1 %v506_v34, %s976_s26  ;;  %p905_p3 = pnand %p904_p0, %p898_p10 }
 0x215   : > { %v557_v36 = vpop.permute.xlu0 %556  ;;  %v565_v37 = vpop.permute.xlu1 %564 }
 0x219   : > { %v549_v38 = vpop.permute.xlu0 %548  ;;  %v567_v41 = vpop.permute.xlu1 %566 }
 0x21a   : > { %v568_v42 = vsel %vm411_vm1, %v565_v37, %v567_v41  ;;  %v569_v43 = vsel %vm411_vm1, %v567_v41, %v565_v37 }
 0x21b   : > { %v571_v44 = vmul.f32 %v569_v43, %v1205_v15  ;;  %v570_v46 = vmul.f32 %v568_v42, %v1208_v16 }
 0x21d   : > { %v541_v47 = vpop.permute.xlu0 %540  ;;  %595 = vmatprep.subr.mxu1 %v571_v44  ;;  %v559_v49 = vpop.permute.xlu1 %558 }
 0x21e   : > { %v560_v50 = vsel %vm394_vm0, %v557_v36, %v559_v49  ;;  %v561_v51 = vsel %vm394_vm0, %v559_v49, %v557_v36  ;;  %596 = vmatpush1.msra.mxu1 %v570_v46 }
 0x21f   : > { %v562_v52 = vmul.f32 %v560_v50, %v1211_v17  ;;  %v563_v53 = vmul.f32 %v561_v51, %v1214_v18 }
 0x221   : > { %597 = vmatprep.subr.mxu1 %v563_v53  ;;  %v551_v54 = vpop.permute.xlu1 %550  ;;  %v533_v55 = vpop.permute.xlu0 %532 }
 0x222   : > { %v552_v15 = vsel %vm377_vm2, %v549_v38, %v551_v54  ;;  %v553_v16 = vsel %vm377_vm2, %v551_v54, %v549_v38  ;;  %598 = vmatpush1.msra.mxu1 %v562_v52 }
 0x223   : > { %v554_v56 = vmul.f32 %v552_v15, %v1225_v25  ;;  %v555_v59 = vmul.f32 %v553_v16, %v1231_v28 }
 0x225   : > { %599 = vmatprep.subr.mxu1 %v555_v59  ;;  %v543_v60 = vpop.permute.xlu1 %542  ;;  %v525_v2 = vpop.permute.xlu0 %524 }
 0x226   : > { %v544_v17 = vsel %vm360_vm3, %v541_v47, %v543_v60  ;;  %v545_v18 = vsel %vm360_vm3, %v543_v60, %v541_v47  ;;  %600 = vmatpush1.msra.mxu1 %v554_v56 }
 0x227   : > { %v546_v61 = vmul.f32 %v544_v17, %v1245_v39  ;;  %v547_v62 = vmul.f32 %v545_v18, %v1248_v40 }
 0x229   : > { %601 = vmatprep.subr.mxu1 %v547_v62  ;;  %v535_v3 = vpop.permute.xlu1 %534  ;;  %v517_v12 = vpop.permute.xlu0 %516 }
 0x22a   : > { %v536_v25 = vsel %vm343_vm4, %v533_v55, %v535_v3  ;;  %v537_v28 = vsel %vm343_vm4, %v535_v3, %v533_v55  ;;  %602 = vmatpush1.msra.mxu1 %v546_v61 }
 0x22b   : > { %v538_v5 = vmul.f32 %v537_v28, %v1256_v45  ;;  %v539_v8 = vmul.f32 %v536_v25, %v1261_v48  ;;  %603 = vmatprep.subr.mxu1 %v506_v34 }
 0x22c   : > { %604 = vmatpush1.msra.mxu1 %v505_v32 }
 0x22d   : > { %605 = vmatprep.subr.mxu1 %v539_v8  ;;  %v527_v39 = vpop.permute.xlu1 %526  ;;  %v509_v23 = vpop.permute.xlu0 %508 }
 0x22e   : > { %v528_v40 = vsel %vm326_vm5, %v525_v2, %v527_v39  ;;  %v529_v11 = vsel %vm326_vm5, %v527_v39, %v525_v2  ;;  %606 = vmatpush1.msra.mxu1 %v538_v5 }
 0x22f   : > { %v530_v13 = vmul.f32 %v529_v11, %v1274_v57  ;;  %v531_v14 = vmul.f32 %v528_v40, %v1277_v58 }
 0x231   : > { %607 = vmatprep.subr.mxu1 %v531_v14  ;;  %v519_v45 = vpop.permute.xlu1 %518 }
 0x232   : > { %v520_v48 = vsel %vm309_vm6, %v517_v12, %v519_v45  ;;  %v521_v19 = vsel %vm309_vm6, %v519_v45, %v517_v12  ;;  %608 = vmatpush1.msra.mxu1 %v530_v13 }
 0x233   : > { %v522_v21 = vmul.f32 %v521_v19, %v1286_v63  ;;  %v523_v22 = vmul.f32 %v520_v48, %v1291_v4  ;;  %v507_v63 = vld [vmem:[%s1428_s4] sm:$0xff] }
 0x235   : > { %609 = vmatprep.subr.mxu1 %v523_v22  ;;  %v511_v24 = vpop.permute.xlu1 %510 }
 0x236   : > { %v512_v57 = vsel %vm292_vm7, %v509_v23, %v511_v24  ;;  %v513_v58 = vsel %vm292_vm7, %v511_v24, %v509_v23  ;;  %610 = vmatpush1.msra.mxu1 %v522_v21 }
 0x237   : > { %v514_v26 = vmul.f32 %v513_v58, %v1302_v20  ;;  %v515_v27 = vmul.f32 %v512_v57, %v1305_v6 }
 0x239   : > { %611 = vmatprep.subr.mxu1 %v515_v27 }
 0x23a   : > { %612 = vmatpush1.msra.mxu1 %v514_v26  ;;  %v576_v4 = vpop.permute.xlu0 %575 }
 0x23b   : > { %765 = vmatmul.mubr.msk.f32.vlgmr.msra.gmra.mxu1 %vm430_vm8, %v507_v63 }
 0x2fb   : > { %v647_v29 = vpop.f32.mrf.mxu1 }
 0x2fc   : > { %v648_v9 = vadd.f32 %v647_v29, %v576_v4 }
 0x2fd   : > { %v649_v7 = vpop.f32.mrf.mxu1 }
 0x2fe   : > { %v652_v10 = vadd.f32 %v648_v9, %v1146_v0  ;;  %v650_v30 = vadd.f32 %v649_v7, %v576_v4 }
 0x300   : > { %v654_v20 = vmax.f32 %v652_v10, 0.0  ;;  %v653_v6 = vadd.f32 %v650_v30, %v1152_v1 }
 0x302   : > { %656 = vst [vmem:[%s280_s11] sm:$0xff] %v654_v20  ;;  %v655_v31 = vmax.f32 %v653_v6, 0.0 }
 0x304   : > { %657 = vst [vmem:[%s280_s11 + $0x8] sm:$0xff] %v655_v31 }
 0x305   : > { %908 = shalt.err (!%p905_p3)
}
 0x306   : > { %s909_s2 = scalar_lea.hbm %s671_s30, 256  ;;  %s913_s19 = scalar_lea.hbm %s1430_s6, 512 }
 0x307   : > { %p910_p12 = scmp.ne.s32.totalorder %s671_s30, %s909_s2  ;;  %p914_p4 = scmp.lt.s32.totalorder %s671_s30, %s1430_s6 }
 0x308   : > { %p915_p6 = scmp.lt.s32.totalorder %s913_s19, %s909_s2 }
 0x309   : > { %p911_p5 = pnand %p910_p12, %p1449_p11 }
 0x30a   : > { %p916_p8 = por %p915_p6, %p914_p4 }
 0x30b   : > { %p912_p7 = pneg %p911_p5 }
 0x30d   : > { %p917_p9 = pnand %p916_p8, %p912_p7 }
 0x30f   : > { %920 = shalt.err (!%p917_p9)
}
 0x310   : > { %779 = dma.vmem_to_hbm [thread:$0]  (%p1449_p11), %s674_s12, 256, %s671_s30, %s659_s18  }
 0x311 PF: > { %s685_s10 = sand.u32 1, %s951_s21   ;;  %p1450_p13 = scmp.ne.s32.totalorder %s1437_s28, 0 }
 0x312   : > { %p1451_p10 = scmp.ge.s32.totalorder %s963_s24, 2  ;;  %s686_s11 = scalar_lea.sflag [#allocation4], %s685_s10 }
 0x314   : > { %p790_p1 = pnand %p1451_p10, %p1450_p13 }
 0x316   : > { %p791_p2 = pneg %p790_p1 }
 0x318   : > { %946 = dma.done.wait (%p791_p2), %s686_s11, 256  }
 0x319   : > { %948 = vsyncadd (%p791_p2), %s686_s11, 4294967040  ;;  %p20_p0 = scmp.ge.s32.totalorder %s1061_s8, 4   ;;  %s1452_s21 = smov %s955_s22 }
 0x31a   : > { %s1453_s22 = smov %s959_s23  ;;  %s1454_s23 = smov %s1088_s16 }
 0x31b   : > { %s1455_s24 = smov %s1061_s8  ;;  %22 = sbr.rel (!%p20_p0) target bundleno = 8 (0x8), region = 93 }
 0x320   :  { %691 = vsyncpa [#allocation3], 1 }
 0x321   :  { %693 = vsyncpa [#allocation3 + $0x1], 1 }
 0x322   :  { %694 = vsyncpa [#allocation6], 1 }
 0x323   :  { %695 = vsyncpa [#allocation4], 1 }
 0x324   :  { %697 = vsyncpa [#allocation4 + $0x1], 1 }

</bundles_post_ra>
